<compile_context>
chip_gen: v7x
topology: tpu7x:2x2x1
jax: 0.10.0
libtpu: 0.0.40
codegen_flags: <defaults>
</compile_context>

<pallas_src>
import math

import jax
import jax.numpy as jnp
from jax import lax
from jax.experimental import pallas as pl
from jax.experimental.pallas import tpu as pltpu

_INV_SQRT2 = 1.0 / math.sqrt(2.0)
_LANES = 128


def _gelu_math(x):
    # Exact (erf-based) gelu, matching the reference `gelu` / GeLU module.
    # Transcendental path kept in f32 (per review: EUP has no bf16 on v5e).
    return x * 0.5 * (1.0 + lax.erf(x * _INV_SQRT2))


def gelu_kernel(x_ref, o_ref):
    o_ref[...] = _gelu_math(x_ref[...])


def gelu(x, *, block_rows=1024):
    """Elementwise exact-erf GeLU via Pallas. Accepts any input shape/size."""
    orig_shape = x.shape
    flat = x.reshape(-1)
    n = flat.shape[0]
    rows = pl.cdiv(n, _LANES)

    if rows <= block_rows:
        # Small case (e.g. the test shape): one grid-less call, one operand DMA,
        # fully VMEM-resident. A grid here would be pure serial-loop overhead.
        rows_p = rows
        grid_kwargs = {}
    else:
        # Scaled-up case: row-blocked grid over lane-dense (block_rows, 128)
        # tiles; "parallel" lets v7x shard the grid across both TensorCores.
        rows_p = pl.cdiv(rows, block_rows) * block_rows
        grid_kwargs = dict(
            grid=(rows_p // block_rows,),
            in_specs=[pl.BlockSpec((block_rows, _LANES), lambda i: (i, 0))],
            out_specs=pl.BlockSpec((block_rows, _LANES), lambda i: (i, 0)),
            compiler_params=pltpu.CompilerParams(
                dimension_semantics=("parallel",)),
        )

    padded = rows_p * _LANES
    if padded != n:
        # gelu(0) == 0, so zero padding is harmless and sliced off below.
        flat = jnp.pad(flat, (0, padded - n))
    x2 = flat.reshape(rows_p, _LANES)

    out = pl.pallas_call(
        gelu_kernel,
        out_shape=jax.ShapeDtypeStruct((rows_p, _LANES), x.dtype),
        **grid_kwargs,
    )(x2)

    return out.reshape(-1)[:n].reshape(orig_shape)


# ----------------------------- pure-JAX reference -----------------------------
def gelu_ref(x):
    return x * 0.5 * (1.0 + lax.erf(x * _INV_SQRT2))


if __name__ == "__main__":
    key = jax.random.PRNGKey(0)
    k1, k2 = jax.random.split(key)

    # Small shape consistent with where GeLU is used in the model
    # (hidden activations): batch=2, seq=8, hidden=32.
    x_small = jax.random.normal(k1, (2, 8, 32), jnp.float32) * 3.0
    out_small = jax.block_until_ready(gelu(x_small))
    assert out_small.shape == x_small.shape
    assert jnp.allclose(out_small, gelu_ref(x_small), atol=2e-5, rtol=2e-5), \
        "small-shape mismatch vs JAX reference"

    # Larger input to exercise the tiled, megacore-parallel grid path.
    x_big = jax.random.normal(k2, (4, 128, 1024), jnp.float32) * 3.0
    out_big = jax.block_until_ready(gelu(x_big))
    assert jnp.allclose(out_big, gelu_ref(x_big), atol=2e-5, rtol=2e-5), \
        "tiled-shape mismatch vs JAX reference"

    print("KERNEL_OK")
</pallas_src>

<mosaic_0001>
module attributes {stable_mosaic.version = 11 : i64} {
  func.func @gelu_kernel(%arg0: memref<4x128xf32, #tpu.memory_space<vmem>>, %arg1: memref<4x128xf32, #tpu.memory_space<vmem>>) attributes {dimension_semantics = [], scalar_prefetch = 0 : i64, scratch_operands = 0 : i64, tpu.core_type = #tpu.core_type<tc>} {
    %c0 = arith.constant 0 : index
    %c0_0 = arith.constant 0 : index
    %0 = vector.load %arg0[%c0, %c0_0] : memref<4x128xf32, #tpu.memory_space<vmem>>, vector<4x128xf32>
    %cst = arith.constant 5.000000e-01 : f32
    %1 = vector.broadcast %cst : f32 to vector<4x128xf32>
    %2 = arith.mulf %0, %1 : vector<4x128xf32>
    %cst_1 = arith.constant 0.707106769 : f32
    %3 = vector.broadcast %cst_1 : f32 to vector<4x128xf32>
    %4 = arith.mulf %0, %3 : vector<4x128xf32>
    %5 = math.erf %4 : vector<4x128xf32>
    %cst_2 = arith.constant 1.000000e+00 : f32
    %6 = vector.broadcast %cst_2 : f32 to vector<4x128xf32>
    %7 = arith.addf %6, %5 : vector<4x128xf32>
    %8 = arith.mulf %2, %7 : vector<4x128xf32>
    %c0_3 = arith.constant 0 : index
    %c0_4 = arith.constant 0 : index
    %9 = vector.load %arg1[%c0_3, %c0_4] : memref<4x128xf32, #tpu.memory_space<vmem>>, vector<4x128xf32>
    tpu.vector_store %arg1[%c0_3, %c0_4], %8 {strides = array<i32>} : memref<4x128xf32, #tpu.memory_space<vmem>>, vector<4x128xf32>,
    return
  }
}

</mosaic_0001>

<bundles_post_ra>
// kernel: tpu_custom_call.1
= control target key start
LH: loop header
LB: loop body
LE: loop exit
PB: predicated region body
PF: predicated region fallthrough
CT: control target
= control target key end

     0   :  { %6 = vsyncpa [#allocation3], 0  ;;  %s131_s0 = inlined_call_operand.hbm [shape: f32[4,128], index: 0, kind: input, shape index: {}]   ;;  %s132_s1 = inlined_call_operand.hbm [shape: f32[4,128], index: 1, kind: output, shape index: {}]  }
   0x1   :  { %7 = vsyncpa [#allocation4], 0  ;;  %s95_s6 = smov [#allocation2]   ;;  %s47_s10 = scalar_lea.hbm %s131_s0, 64 }
   0x2   :  { %s14_s7 = sshll.u32 %s95_s6, 4  ;;  %p48_p0 = scmp.ne.s32.totalorder %s131_s0, %s47_s10  ;;  %s15_s7 = int_to_ptr.vmem [resolvable:$true] %s14_s7 }
   0x3   :  { %p51_p1 = scmp.lt.u32.totalorder %s47_s10, %s131_s0 }
   0x5   :  { %p53_p2 = pnand %p51_p1, %p48_p0 }
   0x7   :  { %56 = shalt.err (!%p53_p2)
}
   0x8   :  { %s57_s15 = scalar_lea.vmem %s15_s7, 64  ;;  %p62_p4 = scmp.lt.s32.totalorder %s15_s7, %s15_s7 }
   0x9   :  { %p58_p3 = scmp.ne.s32.totalorder %s15_s7, %s57_s15  ;;  %p63_p5 = scmp.lt.s32.totalorder %s57_s15, %s57_s15 }
   0xb   :  { %p64_p6 = por %p63_p5, %p62_p4 }
   0xd   :  { %p65_p7 = pnand %p64_p6, %p58_p3 }
   0xf   :  { %68 = shalt.err (!%p65_p7)
}
  0x10   :  { %17 = dma.hbm_to_vmem [thread:$0]  %s131_s0, 64, %s15_s7, [#allocation3]  }
  0x11   :  { %91 = dma.done.wait [#allocation3], 64  }
  0x12   :  { %92 = vsyncadd [#allocation3], 4294967232  ;;  %v21_v0 = vld [vmem:[#allocation2] sm:$0xf]  ;;  %s96_s18 = smov [#allocation5]  }
  0x13   :  { %v23_v1 = vmul.f32 0.70710677, %v21_v0  ;;  %v22_v2 = vmul.f32 0.5, %v21_v0  ;;  %s34_s19 = sshll.u32 %s96_s18, 4  ;;  %s35_s19 = int_to_ptr.vmem [resolvable:$true] %s34_s19 }
  0x14   :  { %s69_s20 = scalar_lea.vmem %s35_s19, 64  ;;  %p74_p9 = scmp.lt.s32.totalorder %s35_s19, %s35_s19 }
  0x15   :  { %45 = verf.f32 %v23_v1  ;;  %p70_p8 = scmp.ne.s32.totalorder %s35_s19, %s69_s20  ;;  %p75_p10 = scmp.lt.s32.totalorder %s69_s20, %s69_s20 }
  0x17   :  { %p76_p11 = por %p75_p10, %p74_p9 }
  0x19   :  { %p77_p12 = pnand %p76_p11, %p70_p8 }
  0x1f   :  { %v46_v3 = vpop.eup %45 }
  0x20   :  { %v25_v4 = vadd.f32 1.0, %v46_v3 }
  0x22   :  { %v26_v5 = vmul.f32 %v25_v4, %v22_v2 }
  0x24   :  { %27 = vst [vmem:[#allocation5] sm:$0xf] %v26_v5 }
  0x25   :  { %80 = shalt.err (!%p77_p12)
}
  0x26   :  { %s81_s22 = scalar_lea.hbm %s132_s1, 64 }
  0x27   :  { %p82_p13 = scmp.ne.s32.totalorder %s132_s1, %s81_s22  ;;  %p85_p0 = scmp.lt.u32.totalorder %s81_s22, %s132_s1 }
  0x29   :  { %p87_p1 = pnand %p85_p0, %p82_p13 }
  0x2b   :  { %90 = shalt.err (!%p87_p1)
}
  0x2c   :  { %37 = dma.vmem_to_hbm [thread:$0]  %s35_s19, 64, %s132_s1, [#allocation4]  }
  0x2d   :  { %93 = dma.done.wait [#allocation4], 64  }
  0x2e   :  { %94 = vsyncadd [#allocation4], 4294967232 }
  0x2f   :  { %41 = vsyncpa [#allocation3], 1 }
  0x30   :  { %42 = vsyncpa [#allocation4], 1 }

</bundles_post_ra>
